<compile_context>
chip_gen: v7x
topology: tpu7x:2x2x1
jax: 0.10.0
libtpu: 0.0.40
codegen_flags: <defaults>
</compile_context>

<pallas_src>
import math
from functools import partial

import jax
import jax.numpy as jnp
from jax.experimental import pallas as pl
from jax.experimental.pallas import tpu as pltpu

_LANES = 128


def _add_kernel(a_ref, b_ref, o_ref):
    # Elementwise add on the whole VMEM-resident block (VPU).
    o_ref[...] = a_ref[...] + b_ref[...]


def _pallas_add_2d(a2, b2):
    """Single-block lane-dense add; a2/b2 are (rows, 128)."""
    shape2d = a2.shape
    nbytes = a2.size * a2.dtype.itemsize
    return pl.pallas_call(
        _add_kernel,
        out_shape=jax.ShapeDtypeStruct(shape2d, a2.dtype),
        in_specs=[
            pl.BlockSpec(shape2d, lambda: (0, 0),
                         memory_space=pltpu.MemorySpace.VMEM),
            pl.BlockSpec(shape2d, lambda: (0, 0),
                         memory_space=pltpu.MemorySpace.VMEM),
        ],
        out_specs=pl.BlockSpec(shape2d, lambda: (0, 0),
                               memory_space=pltpu.MemorySpace.VMEM),
        # Reuse input 0's buffer as the output buffer (effective because the
        # jitted caller donates x290).
        input_output_aliases={0: 0},
        # Tiny op: 1 flop/elem, 2 reads + 1 write.
        cost_estimate=pl.CostEstimate(
            flops=a2.size, transcendentals=0, bytes_accessed=3 * nbytes),
    )(a2, b2)


@partial(jax.jit, donate_argnums=(0,))
def pallas_add(x290, x275):
    assert x290.shape == x275.shape and x290.dtype == x275.dtype
    orig_shape = x290.shape
    total = math.prod(orig_shape)

    a = x290.reshape(total)
    b = x275.reshape(total)

    # Lane-dense 2D layout: pad up to a multiple of 128 lanes if needed so we
    # never emit lane-sparse masked stores.
    pad = (-total) % _LANES
    if pad:
        a = jnp.pad(a, (0, pad))
        b = jnp.pad(b, (0, pad))
    rows = (total + pad) // _LANES

    out2 = _pallas_add_2d(a.reshape(rows, _LANES), b.reshape(rows, _LANES))

    out = out2.reshape(rows * _LANES)
    if pad:
        out = out[:total]
    return out.reshape(orig_shape)


if __name__ == "__main__":
    key = jax.random.PRNGKey(0)
    k1, k2 = jax.random.split(key)
    # Shapes implied by the module: [1, 160, 14, 14], float32 (already small).
    x290 = jax.random.normal(k1, (1, 160, 14, 14), dtype=jnp.float32)
    x275 = jax.random.normal(k2, (1, 160, 14, 14), dtype=jnp.float32)

    # Compute the reference BEFORE the kernel call: x290's buffer is donated
    # to pallas_add and must not be read afterwards.
    ref = x290 + x275

    out = pallas_add(x290, x275)
    jax.block_until_ready(out)

    assert out.shape == ref.shape and out.dtype == ref.dtype
    assert jnp.allclose(out, ref, atol=1e-6, rtol=1e-6)

    print("KERNEL_OK")
</pallas_src>

<mosaic_0001>
module attributes {stable_mosaic.version = 11 : i64} {
  func.func @_add_kernel(%arg0: memref<245x128xf32, #tpu.memory_space<vmem>>, %arg1: memref<245x128xf32, #tpu.memory_space<vmem>>, %arg2: memref<245x128xf32, #tpu.memory_space<vmem>>) attributes {dimension_semantics = [], scalar_prefetch = 0 : i64, scratch_operands = 0 : i64, tpu.core_type = #tpu.core_type<tc>} {
    %c0 = arith.constant 0 : index
    %c0_0 = arith.constant 0 : index
    %0 = vector.load %arg0[%c0, %c0_0] : memref<245x128xf32, #tpu.memory_space<vmem>>, vector<245x128xf32>
    %c0_1 = arith.constant 0 : index
    %c0_2 = arith.constant 0 : index
    %1 = vector.load %arg1[%c0_1, %c0_2] : memref<245x128xf32, #tpu.memory_space<vmem>>, vector<245x128xf32>
    %2 = arith.addf %0, %1 : vector<245x128xf32>
    %c0_3 = arith.constant 0 : index
    %c0_4 = arith.constant 0 : index
    %3 = vector.load %arg2[%c0_3, %c0_4] : memref<245x128xf32, #tpu.memory_space<vmem>>, vector<245x128xf32>
    tpu.vector_store %arg2[%c0_3, %c0_4], %2 {strides = array<i32>} : memref<245x128xf32, #tpu.memory_space<vmem>>, vector<245x128xf32>,
    return
  }
}

</mosaic_0001>

<bundles_post_ra>
// kernel: pallas_add.1
= control target key start
LH: loop header
LB: loop body
LE: loop exit
PB: predicated region body
PF: predicated region fallthrough
CT: control target
= control target key end

     0   :  { %s433_s0 = inlined_call_operand.vmem [shape: f32[245,128], index: 0, kind: input, shape index: {}, may-alias: {0,2}]   ;;  %s434_s1 = inlined_call_operand.vmem [shape: f32[245,128], index: 1, kind: input, shape index: {}]   ;;  %s435_s2 = inlined_call_operand.vmem [shape: f32[245,128], index: 2, kind: output, shape index: {}, may-alias: {0,2}]  }
   0x1   :  { %v11_v0 = vld [vmem:[%s433_s0] sm:$0xff]  ;;  %v12_v2 = vld [vmem:[%s433_s0 + $0x8] sm:$0xff]  ;;  %v13_v5 = vld [vmem:[%s433_s0 + $0x10] sm:$0xff] }
   0x2   :  { %v42_v1 = vld [vmem:[%s434_s1] sm:$0xff]  ;;  %v43_v4 = vld [vmem:[%s434_s1 + $0x8] sm:$0xff]  ;;  %v44_v6 = vld [vmem:[%s434_s1 + $0x10] sm:$0xff] }
   0x3   :  { %v73_v3 = vadd.f32 %v42_v1, %v11_v0  ;;  %v74_v7 = vadd.f32 %v43_v4, %v12_v2  ;;  %v75_v8 = vadd.f32 %v44_v6, %v13_v5  ;;  %v14_v9 = vld [vmem:[%s433_s0 + $0x18] sm:$0xff]  ;;  %v15_v11 = vld [vmem:[%s433_s0 + $0x20] sm:$0xff]  ;;  %v47_v15 = vld [vmem:[%s434_s1 + $0x28] sm:$0xff] }
   0x4   :  { %v45_v10 = vld [vmem:[%s434_s1 + $0x18] sm:$0xff]  ;;  %v46_v13 = vld [vmem:[%s434_s1 + $0x20] sm:$0xff]  ;;  %v48_v19 = vld [vmem:[%s434_s1 + $0x30] sm:$0xff] }
   0x5   :  { %104 = vst [vmem:[%s435_s2] sm:$0xff] %v73_v3  ;;  %v76_v12 = vadd.f32 %v45_v10, %v14_v9  ;;  %v77_v16 = vadd.f32 %v46_v13, %v15_v11  ;;  %v49_v22 = vld [vmem:[%s434_s1 + $0x38] sm:$0xff]  ;;  %v50_v24 = vld [vmem:[%s434_s1 + $0x40] sm:$0xff]  ;;  %v51_v28 = vld [vmem:[%s434_s1 + $0x48] sm:$0xff] }
   0x6   :  { %v52_v31 = vld [vmem:[%s434_s1 + $0x50] sm:$0xff]  ;;  %v53_v33 = vld [vmem:[%s434_s1 + $0x58] sm:$0xff]  ;;  %v54_v37 = vld [vmem:[%s434_s1 + $0x60] sm:$0xff] }
   0x7   :  { %v55_v40 = vld [vmem:[%s434_s1 + $0x68] sm:$0xff]  ;;  %v56_v42 = vld [vmem:[%s434_s1 + $0x70] sm:$0xff]  ;;  %v57_v46 = vld [vmem:[%s434_s1 + $0x78] sm:$0xff] }
   0x8   :  { %v58_v49 = vld [vmem:[%s434_s1 + $0x80] sm:$0xff]  ;;  %v59_v51 = vld [vmem:[%s434_s1 + $0x88] sm:$0xff]  ;;  %v60_v55 = vld [vmem:[%s434_s1 + $0x90] sm:$0xff] }
   0x9   :  { %v61_v58 = vld [vmem:[%s434_s1 + $0x98] sm:$0xff]  ;;  %v62_v60 = vld [vmem:[%s434_s1 + $0xa0] sm:$0xff]  ;;  %v63_v0 = vld [vmem:[%s434_s1 + $0xa8] sm:$0xff] }
   0xa   :  { %v64_v3 = vld [vmem:[%s434_s1 + $0xb0] sm:$0xff]  ;;  %v65_v5 = vld [vmem:[%s434_s1 + $0xb8] sm:$0xff]  ;;  %v66_v9 = vld [vmem:[%s434_s1 + $0xc0] sm:$0xff] }
   0xc   :  { %v16_v14 = vld [vmem:[%s433_s0 + $0x28] sm:$0xff] }
   0xd   :  { %105 = vst [vmem:[%s435_s2 + $0x8] sm:$0xff] %v74_v7  ;;  %106 = vst [vmem:[%s435_s2 + $0x10] sm:$0xff] %v75_v8  ;;  %v78_v17 = vadd.f32 %v47_v15, %v16_v14  ;;  %v68_v14 = vld [vmem:[%s434_s1 + $0xd0] sm:$0xff] }
  0x14   :  { %v17_v18 = vld [vmem:[%s433_s0 + $0x30] sm:$0xff]  ;;  %v18_v20 = vld [vmem:[%s433_s0 + $0x38] sm:$0xff] }
  0x15   :  { %107 = vst [vmem:[%s435_s2 + $0x18] sm:$0xff] %v76_v12  ;;  %v79_v21 = vadd.f32 %v48_v19, %v17_v18  ;;  %v80_v25 = vadd.f32 %v49_v22, %v18_v20  ;;  %v67_v12 = vld [vmem:[%s434_s1 + $0xc8] sm:$0xff]  ;;  %v69_v18 = vld [vmem:[%s434_s1 + $0xd8] sm:$0xff] }
  0x1c   :  { %v19_v23 = vld [vmem:[%s433_s0 + $0x40] sm:$0xff] }
  0x1d   :  { %108 = vst [vmem:[%s435_s2 + $0x20] sm:$0xff] %v77_v16  ;;  %109 = vst [vmem:[%s435_s2 + $0x28] sm:$0xff] %v78_v17  ;;  %v81_v26 = vadd.f32 %v50_v24, %v19_v23  ;;  %v71_v23 = vld [vmem:[%s434_s1 + $0xe8] sm:$0xff] }
  0x24   :  { %v20_v27 = vld [vmem:[%s433_s0 + $0x48] sm:$0xff]  ;;  %v21_v29 = vld [vmem:[%s433_s0 + $0x50] sm:$0xff] }
  0x25   :  { %110 = vst [vmem:[%s435_s2 + $0x30] sm:$0xff] %v79_v21  ;;  %v82_v30 = vadd.f32 %v51_v28, %v20_v27  ;;  %v83_v34 = vadd.f32 %v52_v31, %v21_v29  ;;  %v70_v21 = vld [vmem:[%s434_s1 + $0xe0] sm:$0xff]  ;;  %v72_v27 = vld [vmem:[%s434_s1 + $0xf0] sm:$0x1f] }
  0x2c   :  { %v22_v32 = vld [vmem:[%s433_s0 + $0x58] sm:$0xff] }
  0x2d   :  { %111 = vst [vmem:[%s435_s2 + $0x38] sm:$0xff] %v80_v25  ;;  %112 = vst [vmem:[%s435_s2 + $0x40] sm:$0xff] %v81_v26  ;;  %v84_v35 = vadd.f32 %v53_v33, %v22_v32 }
  0x34   :  { %v23_v36 = vld [vmem:[%s433_s0 + $0x60] sm:$0xff]  ;;  %v24_v38 = vld [vmem:[%s433_s0 + $0x68] sm:$0xff] }
  0x35   :  { %113 = vst [vmem:[%s435_s2 + $0x48] sm:$0xff] %v82_v30  ;;  %v85_v39 = vadd.f32 %v54_v37, %v23_v36  ;;  %v86_v43 = vadd.f32 %v55_v40, %v24_v38 }
  0x3c   :  { %v25_v41 = vld [vmem:[%s433_s0 + $0x70] sm:$0xff] }
  0x3d   :  { %114 = vst [vmem:[%s435_s2 + $0x50] sm:$0xff] %v83_v34  ;;  %115 = vst [vmem:[%s435_s2 + $0x58] sm:$0xff] %v84_v35  ;;  %v87_v44 = vadd.f32 %v56_v42, %v25_v41 }
  0x44   :  { %v26_v45 = vld [vmem:[%s433_s0 + $0x78] sm:$0xff]  ;;  %v27_v47 = vld [vmem:[%s433_s0 + $0x80] sm:$0xff] }
  0x45   :  { %116 = vst [vmem:[%s435_s2 + $0x60] sm:$0xff] %v85_v39  ;;  %v88_v48 = vadd.f32 %v57_v46, %v26_v45  ;;  %v89_v52 = vadd.f32 %v58_v49, %v27_v47 }
  0x4c   :  { %v28_v50 = vld [vmem:[%s433_s0 + $0x88] sm:$0xff] }
  0x4d   :  { %117 = vst [vmem:[%s435_s2 + $0x68] sm:$0xff] %v86_v43  ;;  %118 = vst [vmem:[%s435_s2 + $0x70] sm:$0xff] %v87_v44  ;;  %v90_v53 = vadd.f32 %v59_v51, %v28_v50 }
  0x54   :  { %v29_v54 = vld [vmem:[%s433_s0 + $0x90] sm:$0xff]  ;;  %v30_v56 = vld [vmem:[%s433_s0 + $0x98] sm:$0xff] }
  0x55   :  { %119 = vst [vmem:[%s435_s2 + $0x78] sm:$0xff] %v88_v48  ;;  %v91_v57 = vadd.f32 %v60_v55, %v29_v54  ;;  %v92_v61 = vadd.f32 %v61_v58, %v30_v56 }
  0x5c   :  { %v31_v59 = vld [vmem:[%s433_s0 + $0xa0] sm:$0xff] }
  0x5d   :  { %120 = vst [vmem:[%s435_s2 + $0x80] sm:$0xff] %v89_v52  ;;  %121 = vst [vmem:[%s435_s2 + $0x88] sm:$0xff] %v90_v53  ;;  %v93_v62 = vadd.f32 %v62_v60, %v31_v59 }
  0x64   :  { %v32_v63 = vld [vmem:[%s433_s0 + $0xa8] sm:$0xff]  ;;  %v33_v1 = vld [vmem:[%s433_s0 + $0xb0] sm:$0xff] }
  0x65   :  { %122 = vst [vmem:[%s435_s2 + $0x90] sm:$0xff] %v91_v57  ;;  %v94_v2 = vadd.f32 %v63_v0, %v32_v63  ;;  %v95_v6 = vadd.f32 %v64_v3, %v33_v1 }
  0x6c   :  { %v34_v4 = vld [vmem:[%s433_s0 + $0xb8] sm:$0xff] }
  0x6d   :  { %123 = vst [vmem:[%s435_s2 + $0x98] sm:$0xff] %v92_v61  ;;  %124 = vst [vmem:[%s435_s2 + $0xa0] sm:$0xff] %v93_v62  ;;  %v96_v7 = vadd.f32 %v65_v5, %v34_v4 }
  0x74   :  { %v35_v8 = vld [vmem:[%s433_s0 + $0xc0] sm:$0xff]  ;;  %v36_v10 = vld [vmem:[%s433_s0 + $0xc8] sm:$0xff] }
  0x75   :  { %125 = vst [vmem:[%s435_s2 + $0xa8] sm:$0xff] %v94_v2  ;;  %v97_v11 = vadd.f32 %v66_v9, %v35_v8  ;;  %v98_v15 = vadd.f32 %v67_v12, %v36_v10 }
  0x7c   :  { %v37_v13 = vld [vmem:[%s433_s0 + $0xd0] sm:$0xff] }
  0x7d   :  { %126 = vst [vmem:[%s435_s2 + $0xb0] sm:$0xff] %v95_v6  ;;  %127 = vst [vmem:[%s435_s2 + $0xb8] sm:$0xff] %v96_v7  ;;  %v99_v16 = vadd.f32 %v68_v14, %v37_v13 }
  0x84   :  { %v38_v17 = vld [vmem:[%s433_s0 + $0xd8] sm:$0xff]  ;;  %v39_v19 = vld [vmem:[%s433_s0 + $0xe0] sm:$0xff] }
  0x85   :  { %128 = vst [vmem:[%s435_s2 + $0xc0] sm:$0xff] %v97_v11  ;;  %v100_v20 = vadd.f32 %v69_v18, %v38_v17  ;;  %v101_v24 = vadd.f32 %v70_v21, %v39_v19 }
  0x8c   :  { %v40_v22 = vld [vmem:[%s433_s0 + $0xe8] sm:$0xff] }
  0x8d   :  { %129 = vst [vmem:[%s435_s2 + $0xc8] sm:$0xff] %v98_v15  ;;  %130 = vst [vmem:[%s435_s2 + $0xd0] sm:$0xff] %v99_v16  ;;  %v102_v25 = vadd.f32 %v71_v23, %v40_v22 }
  0x94   :  { %v41_v26 = vld [vmem:[%s433_s0 + $0xf0] sm:$0x1f] }
  0x95   :  { %131 = vst [vmem:[%s435_s2 + $0xd8] sm:$0xff] %v100_v20  ;;  %v103_v28 = vadd.f32 %v72_v27, %v41_v26  ;;  %132 = vst [vmem:[%s435_s2 + $0xe0] sm:$0xff] %v101_v24 }
  0x96   :  { %133 = vst [vmem:[%s435_s2 + $0xe8] sm:$0xff] %v102_v25 }
  0x97   :  { %134 = vst [vmem:[%s435_s2 + $0xf0] sm:$0x1f] %v103_v28 }

</bundles_post_ra>
